<compile_context>
chip_gen: v7x
topology: tpu7x:2x2x1
jax: 0.10.0
libtpu: 0.0.40
codegen_flags: <defaults>
</compile_context>

<pallas_src>
import functools
import math

import jax
import jax.numpy as jnp
from jax import lax
from jax.experimental import pallas as pl
from jax.experimental.pallas import tpu as pltpu

LN_EPS = 1e-5  # PyTorch nn.LayerNorm default
_MIB = 1024 * 1024


def _round_up(x, m):
    return -(-x // m) * m


def _sublane_multiple(dtype):
    # bf16/fp8 pack along sublanes -> min row multiple 16; f32 -> 8.
    return 16 if jnp.dtype(dtype).itemsize < 4 else 8


@functools.lru_cache(maxsize=None)
def _tpu_budget():
    """(physical VMEM bytes per TensorCore, TensorCores per device)."""
    vmem_cap = 64 * _MIB          # conservative default = v7x per-TC VMEM
    n_cores = 1
    try:
        info = pltpu.get_tpu_info()
        vmem_cap = int(getattr(info, "vmem_capacity_bytes", vmem_cap) or vmem_cap)
        for attr in ("num_cores", "core_count", "num_tensorcores"):
            v = getattr(info, attr, None)
            if v:
                n_cores = max(n_cores, int(v))
                break
    except Exception:
        pass
    try:
        dev = jax.devices()[0]
        v = getattr(dev, "num_cores", None)
        if v:
            n_cores = max(n_cores, int(v))
        kind = str(getattr(dev, "device_kind", "")).lower()
        if any(t in kind for t in ("v7", "v5p", "v4")):   # 2 TCs per device
            n_cores = max(n_cores, 2)
    except Exception:
        pass
    return vmem_cap, n_cores


def _pick_tile_rows(n_rows, bytes_per_row, *, vmem_budget, target_rows,
                    sublane, n_cores):
    """Largest sublane-aligned row tile within the VMEM budget (capped at
    target_rows).  Full-fit single block when everything fits; on 2-TC chips
    keep >= 2 grid steps so the 'parallel' row axis shards across cores."""
    max_by_vmem = max(sublane,
                      (vmem_budget // max(1, bytes_per_row)) // sublane * sublane)
    tile = min(_round_up(target_rows, sublane), max_by_vmem)
    if tile >= n_rows:
        tile = n_rows                      # single full block (no (8,128) constraint)
        if n_cores >= 2 and n_rows >= 2 * sublane:
            # Multi-TensorCore chip: guarantee >= 2 parallel grid steps.
            tile = _round_up((n_rows + 1) // 2, sublane)
    # TODO(synk): on 2-TC chips round the step count to an even number so a ragged
    # tail does not leave one TensorCore idle.
    return max(1, int(tile))


def _pick_tile_n(n_out):
    if n_out <= 128:
        return n_out
    for cand in (512, 384, 256, 128):      # prefer an exact divisor: unmasked stores
        if n_out % cand == 0:
            return cand
    return min(256, (n_out // 128) * 128)  # ragged tail -> masked store on last block


def _pick_tile_k(dim):
    # Only K-tile when dim is large and 128-aligned; tile_k must divide dim exactly.
    if dim % 128 != 0 or dim <= 1024:
        return dim
    for cand in (512, 384, 256, 128):
        if dim % cand == 0:
            return cand
    return dim
    # TODO(synk): support ragged K chunks (dim large but not 128-aligned).


# ---------------------------------------------------------------------------
# LayerNorm kernels (general PreNorm path: fn stays outside).
# ---------------------------------------------------------------------------
def _layernorm_kernel(x_ref, g_ref, b_ref, o_ref):
    # x_ref: (tile_rows, dim) ; g_ref / b_ref: (1, dim)
    x = x_ref[...].astype(jnp.float32)
    mean = jnp.mean(x, axis=-1, keepdims=True)
    c = x - mean
    var = jnp.mean(c * c, axis=-1, keepdims=True)   # two-pass: no cancellation
    y = c * lax.rsqrt(var + LN_EPS)                  # EUP slot, effectively free
    o_ref[...] = (y * g_ref[...].astype(jnp.float32)
                  + b_ref[...].astype(jnp.float32)).astype(o_ref.dtype)


def _layernorm_folded_kernel(x_ref, g_ref, b_ref, seg_ref, o_ref):
    # Lane-folded path: each kernel row holds `fold` original rows back to back
    # (width = fold*dim, a multiple of 128 -> lane-dense loads/stores).
    # seg_ref is a (width, width) block-diagonal averaging matrix with entries
    # 1/dim inside each dim-sized segment, so x @ seg broadcasts each segment's
    # mean across that segment's lanes (MXU; otherwise idle in this kernel).
    x = x_ref[...].astype(jnp.float32)
    seg = seg_ref[...]
    mean_b = jnp.dot(x, seg, preferred_element_type=jnp.float32)
    c = x - mean_b
    var_b = jnp.dot(c * c, seg, preferred_element_type=jnp.float32)
    y = c * lax.rsqrt(var_b + LN_EPS)
    o_ref[...] = (y * g_ref[...].astype(jnp.float32)
                  + b_ref[...].astype(jnp.float32)).astype(o_ref.dtype)


def layernorm_pallas(x, gamma, beta, *, tile_rows=None, fold_lanes=True):
    """LayerNorm over the last axis of x (any leading shape), Pallas hot path."""
    orig_shape = x.shape
    dim = orig_shape[-1]
    n_rows_total = int(math.prod(orig_shape[:-1])) if len(orig_shape) > 1 else 1

    vmem_cap, n_cores = _tpu_budget()
    sub = _sublane_multiple(x.dtype)
    itemsize = jnp.dtype(x.dtype).itemsize

    # Lane folding for dim not a multiple of 128 (lane-dense stores).
    fold = 1
    if fold_lanes and dim % 128 != 0:
        f = 128 // math.gcd(dim, 128)
        if f > 1 and f * dim <= 512 and n_rows_total % f == 0 and n_rows_total >= f:
            fold = f
    width = fold * dim
    rows = n_rows_total // fold
    x2 = x.reshape(rows, width)

    if fold == 1:
        g2 = gamma.reshape(1, dim)
        b2 = beta.reshape(1, dim)
        seg = None
    else:
        g2 = jnp.tile(gamma.reshape(1, dim), (1, fold))
        b2 = jnp.tile(beta.reshape(1, dim), (1, fold))
        seg_ids = jnp.arange(width, dtype=jnp.int32) // dim
        seg = (seg_ids[:, None] == seg_ids[None, :]).astype(jnp.float32) / float(dim)

    # Bytes per row of the 2-D view: in+out double-buffered (4x IO dtype) plus
    # ~4 tile-sized f32 intermediates (upcast, centered, broadcast stats).
    bytes_per_row = width * (4 * itemsize + 4 * 4)
    budget = min(64 * _MIB, vmem_cap // 2)
    if tile_rows is None:
        tile_rows = _pick_tile_rows(rows, bytes_per_row, vmem_budget=budget,
                                    target_rows=1024, sublane=sub, n_cores=n_cores)
    else:
        tile_rows = min(int(tile_rows), rows)
        if tile_rows < rows:
            tile_rows = max(sub, (tile_rows // sub) * sub)

    grid = (pl.cdiv(rows, tile_rows),)

    needed = (tile_rows * bytes_per_row
              + (width * width * 4 if fold > 1 else 0)
              + 4 * width * 4 + 4 * _MIB)
    vmem_limit = int(min(max(needed, 32 * _MIB), vmem_cap - 16 * _MIB))

    in_specs = [pl.BlockSpec((tile_rows, width), lambda i: (i, 0)),
                pl.BlockSpec((1, width), lambda i: (0, 0)),
                pl.BlockSpec((1, width), lambda i: (0, 0))]
    args = [x2, g2, b2]
    kern = _layernorm_kernel
    if fold > 1:
        in_specs.append(pl.BlockSpec((width, width), lambda i: (0, 0)))
        args.append(seg)
        kern = _layernorm_folded_kernel

    out = pl.pallas_call(
        kern,
        out_shape=jax.ShapeDtypeStruct((rows, width), x.dtype),
        grid_spec=pltpu.PrefetchScalarGridSpec(
            num_scalar_prefetch=0,
            grid=grid,
            in_specs=in_specs,
            out_specs=pl.BlockSpec((tile_rows, width), lambda i: (i, 0)),
        ),
        compiler_params=pltpu.CompilerParams(
            dimension_semantics=("parallel",),
            vmem_limit_bytes=vmem_limit,
        ),
    )(*args)

    return out.reshape(orig_shape)


def pre_norm(fn, x, gamma, beta, **kwargs):
    """PreNorm.forward: fn(LayerNorm(x), **kwargs).

    `fn` is an arbitrary user callable (as in the PyTorch module) and stays as
    plain JAX glue.  # TODO(synk): no generic Pallas equivalent for arbitrary fn.
    """
    return fn(layernorm_pallas(x, gamma, beta), **kwargs)


# ---------------------------------------------------------------------------
# Fused LayerNorm + Linear kernel (common PreNorm(dim, nn.Linear(...)) case).
# Normalized activations never round-trip through HBM; gamma/beta pre-folded
# into W/bias; K (contraction) axis grid-tiled with an f32 accumulator.
# ---------------------------------------------------------------------------
def _prenorm_linear_kernel(x_ref, w_ref, bias_ref, o_ref, xn_ref, acc_ref):
    j = pl.program_id(1)
    k = pl.program_id(2)

    # Normalize the row tile once per i (at j==0, k==0) and stash it K-chunked in
    # VMEM; x is read from HBM once per row tile.  gamma/beta are folded into
    # W/bias on the host, so only (x - mean) * rsqrt(var) happens here.
    # NOTE: rows of the ragged last row block contain garbage (possibly NaN/Inf);
    # they only land in output rows that Pallas masks on writeback.
    @pl.when((j == 0) & (k == 0))
    def _():
        x = x_ref[...].astype(jnp.float32)
        mean = jnp.mean(x, axis=-1, keepdims=True)
        c = x - mean
        var = jnp.mean(c * c, axis=-1, keepdims=True)
        y = (c * lax.rsqrt(var + LN_EPS)).astype(xn_ref.dtype)
        nk, _, tk = xn_ref.shape
        for kk in range(nk):                       # static unroll, static lane slices
            xn_ref[kk] = y[:, kk * tk:(kk + 1) * tk]

    @pl.when(k == 0)
    def _():
        acc_ref[...] = jnp.zeros_like(acc_ref)

    acc_ref[...] += jnp.dot(xn_ref[k], w_ref[...],
                            preferred_element_type=jnp.float32)

    @pl.when(k == pl.num_programs(2) - 1)
    def _():
        o_ref[...] = (acc_ref[...] + bias_ref[...]).astype(o_ref.dtype)


def pre_norm_linear_fused(x, gamma, beta, w, bias, *,
                          tile_rows=None, tile_n=None, tile_k=None):
    """fn == Linear(w, bias): fused LayerNorm + matmul in one pallas_call."""
    orig_shape = x.shape
    dim = orig_shape[-1]
    n_out = w.shape[-1]
    x2 = x.reshape(-1, dim)
    rows = x2.shape[0]

    # Fold the LayerNorm affine into the linear layer (host-side, O(dim*n_out)):
    #   (xn*gamma + beta) @ W + bias == xn @ (gamma[:,None]*W) + (beta @ W + bias)
    w_f32 = w.astype(jnp.float32)
    w_fold = (gamma.astype(jnp.float32)[:, None] * w_f32).astype(w.dtype)
    bias_fold = (bias.astype(jnp.float32)
                 + beta.astype(jnp.float32) @ w_f32).reshape(1, n_out)

    vmem_cap, n_cores = _tpu_budget()
    sub = _sublane_multiple(x.dtype)

    if tile_n is None:
        tile_n = _pick_tile_n(n_out)
    tile_n = min(int(tile_n), n_out)

    if tile_k is None:
        tile_k = _pick_tile_k(dim)
    tile_k = min(int(tile_k), dim)
    assert dim % tile_k == 0, "tile_k must divide dim exactly"
    nk = dim // tile_k

    x_item = jnp.dtype(x.dtype).itemsize
    w_item = jnp.dtype(w.dtype).itemsize
    # Fixed VMEM (independent of tile_rows): weight/bias tiles, double-buffered.
    fixed = 2 * tile_k * tile_n * w_item + 2 * tile_n * 4 + 1 * _MIB
    # Per-row VMEM: x tile (double-buffered) + xn scratch + ~2 f32 LN temporaries
    # + out tile (double-buffered) + f32 accumulator.
    per_row = (2 * dim * x_item + dim * x_item + 2 * dim * 4
               + 2 * tile_n * x_item + tile_n * 4)
    budget = min(64 * _MIB, vmem_cap // 2)
    if tile_rows is None:
        tile_rows = _pick_tile_rows(rows, per_row,
                                    vmem_budget=max(per_row, budget - fixed),
                                    target_rows=1024, sublane=sub, n_cores=n_cores)
    else:
        tile_rows = min(int(tile_rows), rows)
        if tile_rows < rows:
            tile_rows = max(sub, (tile_rows // sub) * sub)

    grid = (pl.cdiv(rows, tile_rows), pl.cdiv(n_out, tile_n), nk)

    needed = fixed + tile_rows * per_row + 4 * _MIB
    vmem_limit = int(min(max(needed, 32 * _MIB), vmem_cap - 16 * _MIB))

    out = pl.pallas_call(
        _prenorm_linear_kernel,
        out_shape=jax.ShapeDtypeStruct((rows, n_out), x.dtype),
        grid_spec=pltpu.PrefetchScalarGridSpec(
            num_scalar_prefetch=0,
            grid=grid,
            in_specs=[
                pl.BlockSpec((tile_rows, dim), lambda i, j, k: (i, 0)),   # x (full row)
                pl.BlockSpec((tile_k, tile_n), lambda i, j, k: (k, j)),   # W' (streamed)
                pl.BlockSpec((1, tile_n), lambda i, j, k: (0, j)),        # bias' (f32)
            ],
            out_specs=pl.BlockSpec((tile_rows, tile_n), lambda i, j, k: (i, j)),
            scratch_shapes=[
                pltpu.VMEM((nk, tile_rows, tile_k), x.dtype),   # normalized x, K-chunked
                pltpu.VMEM((tile_rows, tile_n), jnp.float32),   # matmul accumulator
            ],
        ),
        compiler_params=pltpu.CompilerParams(
            dimension_semantics=("parallel", "arbitrary", "arbitrary"),
            vmem_limit_bytes=vmem_limit,
        ),
    )(x2, w_fold, bias_fold)

    return out.reshape(orig_shape[:-1] + (n_out,))


# ---------------------------------------------------------------------------
if __name__ == "__main__":
    key = jax.random.PRNGKey(0)
    batch, seq, dim = 2, 8, 32

    kx, kw, kb, kx2, kw2, kb2, kg2, kbt2 = jax.random.split(key, 8)
    x = jax.random.normal(kx, (batch, seq, dim), dtype=jnp.float32)

    # LayerNorm params — PyTorch default init: weight=1, bias=0.
    gamma = jnp.ones((dim,), dtype=jnp.float32)
    beta = jnp.zeros((dim,), dtype=jnp.float32)

    # Example wrapped `fn`: a deterministic Linear(dim, dim).
    w = jax.random.normal(kw, (dim, dim), dtype=jnp.float32) * 0.02
    b = jax.random.normal(kb, (dim,), dtype=jnp.float32) * 0.02
    fn = lambda h: h @ w + b

    def ln_ref(t, g, bb):
        mean = jnp.mean(t, axis=-1, keepdims=True)
        var = jnp.mean((t - mean) ** 2, axis=-1, keepdims=True)
        return (t - mean) / jnp.sqrt(var + LN_EPS) * g + bb

    # 1) LayerNorm kernel alone (lane-folded path: dim=32 -> 128-wide rows).
    #    Tolerance covers default-precision MXU segmented stats.
    y = layernorm_pallas(x, gamma, beta)
    jax.block_until_ready(y)
    assert jnp.allclose(y, ln_ref(x, gamma, beta), atol=5e-3, rtol=5e-3)

    # 2) General PreNorm path (LayerNorm kernel + arbitrary fn glue).
    out = pre_norm(fn, x, gamma, beta)
    jax.block_until_ready(out)
    ref = fn(ln_ref(x, gamma, beta))
    assert jnp.allclose(out, ref, atol=2e-3, rtol=2e-3)

    # 3) Fused LayerNorm + Linear path (common PreNorm(dim, Linear) case).
    out_fused = pre_norm_linear_fused(x, gamma, beta, w, b)
    jax.block_until_ready(out_fused)
    assert jnp.allclose(out_fused, ref, atol=2e-3, rtol=2e-3)

    # 4) Ragged row count (15 rows): exercises the unfolded, uneven-block path.
    x_r = jax.random.normal(kx2, (3, 5, dim), dtype=jnp.float32)
    out_r = layernorm_pallas(x_r, gamma, beta)
    jax.block_until_ready(out_r)
    assert jnp.all(jnp.isfinite(out_r))
    assert jnp.allclose(out_r, ln_ref(x_r, gamma, beta), atol=2e-3, rtol=2e-3)

    # 5) Fused path with the K- and N-tiled grid exercised (dim=256, n_out=384)
    #    and non-trivial gamma/beta folded into W/bias.
    dim2, n_out2 = 256, 384
    x_big = jax.random.normal(kx2, (4, 16, dim2), dtype=jnp.float32)
    gamma2 = 1.0 + 0.1 * jax.random.normal(kg2, (dim2,), dtype=jnp.float32)
    beta2 = 0.1 * jax.random.normal(kbt2, (dim2,), dtype=jnp.float32)
    w2 = jax.random.normal(kw2, (dim2, n_out2), dtype=jnp.float32) * 0.02
    b2 = jax.random.normal(kb2, (n_out2,), dtype=jnp.float32) * 0.02
    out2 = pre_norm_linear_fused(x_big, gamma2, beta2, w2, b2,
                                 tile_n=128, tile_k=128)
    jax.block_until_ready(out2)
    ref2 = ln_ref(x_big, gamma2, beta2) @ w2 + b2
    assert jnp.allclose(out2, ref2, atol=5e-3, rtol=5e-3)

    print("KERNEL_OK")
</pallas_src>

<mosaic_0001>
module attributes {stable_mosaic.version = 11 : i64} {
  func.func @_layernorm_folded_kernel(%arg0: i32, %arg1: memref<4x128xf32, #tpu.memory_space<vmem>>, %arg2: memref<1x128xf32, #tpu.memory_space<vmem>>, %arg3: memref<1x128xf32, #tpu.memory_space<vmem>>, %arg4: memref<128x128xf32, #tpu.memory_space<vmem>>, %arg5: memref<4x128xf32, #tpu.memory_space<vmem>>) attributes {dimension_semantics = [#tpu.dimension_semantics<parallel>], iteration_bounds = array<i64: 1>, scalar_prefetch = 0 : i64, scratch_operands = 0 : i64, tpu.core_type = #tpu.core_type<tc>, window_params = [{transform_indices = @transform_0, window_bounds = array<i64: 4, 128>}, {pipeline_mode = #tpu.pipeline_mode<synchronous>, transform_indices = @transform_1, window_bounds = array<i64: 1, 128>}, {pipeline_mode = #tpu.pipeline_mode<synchronous>, transform_indices = @transform_2, window_bounds = array<i64: 1, 128>}, {pipeline_mode = #tpu.pipeline_mode<synchronous>, transform_indices = @transform_3, window_bounds = array<i64: 128, 128>}, {transform_indices = @transform_4, window_bounds = array<i64: 4, 128>}]} {
    %c0 = arith.constant 0 : index
    %c0_0 = arith.constant 0 : index
    %0 = vector.load %arg1[%c0, %c0_0] : memref<4x128xf32, #tpu.memory_space<vmem>>, vector<4x128xf32>
    %c0_1 = arith.constant 0 : index
    %c0_2 = arith.constant 0 : index
    %1 = vector.load %arg4[%c0_1, %c0_2] : memref<128x128xf32, #tpu.memory_space<vmem>>, vector<128x128xf32>
    %cst = arith.constant dense<0.000000e+00> : vector<4x128xf32>
    %2 = tpu.matmul %0, %1, %cst {dimension_numbers = #tpu.dot_dimension_numbers<[1], [0], [0], [1], [0, 0, 1, 1], [], []>} : vector<4x128xf32>, vector<128x128xf32>, vector<4x128xf32> -> vector<4x128xf32>
    %3 = arith.subf %0, %2 : vector<4x128xf32>
    %4 = arith.mulf %3, %3 : vector<4x128xf32>
    %cst_3 = arith.constant dense<0.000000e+00> : vector<4x128xf32>
    %5 = tpu.matmul %4, %1, %cst_3 {dimension_numbers = #tpu.dot_dimension_numbers<[1], [0], [0], [1], [0, 0, 1, 1], [], []>} : vector<4x128xf32>, vector<128x128xf32>, vector<4x128xf32> -> vector<4x128xf32>
    %cst_4 = arith.constant 9.99999974E-6 : f32
    %6 = vector.broadcast %cst_4 : f32 to vector<4x128xf32>
    %7 = arith.addf %5, %6 : vector<4x128xf32>
    %8 = math.rsqrt %7 : vector<4x128xf32>
    %9 = arith.mulf %3, %8 : vector<4x128xf32>
    %c0_5 = arith.constant 0 : index
    %c0_6 = arith.constant 0 : index
    %10 = vector.load %arg2[%c0_5, %c0_6] : memref<1x128xf32, #tpu.memory_space<vmem>>, vector<1x128xf32>
    %11 = vector.broadcast %10 : vector<1x128xf32> to vector<4x128xf32>
    %12 = arith.mulf %9, %11 : vector<4x128xf32>
    %c0_7 = arith.constant 0 : index
    %c0_8 = arith.constant 0 : index
    %13 = vector.load %arg3[%c0_7, %c0_8] : memref<1x128xf32, #tpu.memory_space<vmem>>, vector<1x128xf32>
    %14 = vector.broadcast %13 : vector<1x128xf32> to vector<4x128xf32>
    %15 = arith.addf %12, %14 : vector<4x128xf32>
    %c0_9 = arith.constant 0 : index
    %c0_10 = arith.constant 0 : index
    %16 = vector.load %arg5[%c0_9, %c0_10] : memref<4x128xf32, #tpu.memory_space<vmem>>, vector<4x128xf32>
    tpu.vector_store %arg5[%c0_9, %c0_10], %15 {strides = array<i32>} : memref<4x128xf32, #tpu.memory_space<vmem>>, vector<4x128xf32>,
    return
  }
  func.func @transform_0(%arg0: i32) -> (i32, i32) {
    %c0_i32 = arith.constant 0 : i32
    %c0_i32_0 = arith.constant 0 : i32
    return %arg0, %c0_i32 : i32, i32
  }
  func.func @transform_1(%arg0: i32) -> (i32, i32) {
    %c0_i32 = arith.constant 0 : i32
    %c0_i32_0 = arith.constant 0 : i32
    %c0_i32_1 = arith.constant 0 : i32
    return %c0_i32, %c0_i32_0 : i32, i32
  }
  func.func @transform_2(%arg0: i32) -> (i32, i32) {
    %c0_i32 = arith.constant 0 : i32
    %c0_i32_0 = arith.constant 0 : i32
    %c0_i32_1 = arith.constant 0 : i32
    return %c0_i32, %c0_i32_0 : i32, i32
  }
  func.func @transform_3(%arg0: i32) -> (i32, i32) {
    %c0_i32 = arith.constant 0 : i32
    %c0_i32_0 = arith.constant 0 : i32
    %c0_i32_1 = arith.constant 0 : i32
    return %c0_i32, %c0_i32_0 : i32, i32
  }
  func.func @transform_4(%arg0: i32) -> (i32, i32) {
    %c0_i32 = arith.constant 0 : i32
    %c0_i32_0 = arith.constant 0 : i32
    return %arg0, %c0_i32 : i32, i32
  }
}

</mosaic_0001>

<bundles_post_ra>
// kernel: tpu_custom_call.1
= control target key start
LH: loop header
LB: loop body
LE: loop exit
PB: predicated region body
PF: predicated region fallthrough
CT: control target
= control target key end

     0   :  { %9 = vsyncpa [#allocation3], 0  ;;  %s556_s0 = inlined_call_operand.hbm [shape: f32[4,128], index: 0, kind: input, shape index: {}]   ;;  %s557_s1 = inlined_call_operand.vmem [shape: f32[1,128], index: 1, kind: input, shape index: {}]   ;;  %s558_s2 = inlined_call_operand.vmem [shape: f32[1,128], index: 2, kind: input, shape index: {}]   ;;  %s559_s3 = inlined_call_operand.hbm [shape: f32[128,128], index: 3, kind: input, shape index: {}]   ;;  %s560_s4 = inlined_call_operand.hbm [shape: f32[4,128], index: 4, kind: output, shape index: {}]  }
   0x1   :  { %10 = vsyncpa [#allocation6], 0 }
   0x2   :  { %11 = vsyncpa [#allocation4], 0  ;;  %s474_s15 = smov [#allocation2]   ;;  %s475_s17 = smov [#allocation5]  }
   0x3   :  { %s18_s16 = sshll.u32 %s474_s15, 4  ;;  %s31_s18 = sshll.u32 %s475_s17, 4  ;;  %s19_s16 = int_to_ptr.vmem [resolvable:$true] %s18_s16  ;;  %s507_s18 = int_to_ptr.vmem [resolvable:$true] %s31_s18 }
   0x4   :  { %s402_s21 = scalar_lea.hbm %s556_s0, 64 }
   0x5   :  { %p403_p0 = scmp.ne.s32.totalorder %s556_s0, %s402_s21  ;;  %p406_p1 = scmp.lt.u32.totalorder %s402_s21, %s556_s0 }
   0x7   :  { %p408_p2 = pnand %p406_p1, %p403_p0 }
   0x9   :  { %411 = shalt.err (!%p408_p2)
}
   0xa   :  { %s412_s26 = scalar_lea.vmem %s19_s16, 64  ;;  %p417_p4 = scmp.lt.s32.totalorder %s19_s16, %s19_s16 }
   0xb   :  { %p413_p3 = scmp.ne.s32.totalorder %s19_s16, %s412_s26  ;;  %p418_p5 = scmp.lt.s32.totalorder %s412_s26, %s412_s26 }
   0xd   :  { %p419_p6 = por %p418_p5, %p417_p4 }
   0xf   :  { %p420_p7 = pnand %p419_p6, %p413_p3 }
  0x11   :  { %423 = shalt.err (!%p420_p7)
}
  0x12   :  { %21 = dma.hbm_to_vmem [thread:$0]  %s556_s0, 64, %s19_s16, [#allocation3]  }
  0x13   :  { %s424_s5 = scalar_lea.hbm %s559_s3, 2048 }
  0x14   :  { %p425_p8 = scmp.ne.s32.totalorder %s559_s3, %s424_s5  ;;  %p428_p9 = scmp.lt.u32.totalorder %s424_s5, %s559_s3 }
  0x16   :  { %p430_p10 = pnand %p428_p9, %p425_p8 }
  0x18   :  { %433 = shalt.err (!%p430_p10)
}
  0x19   :  { %s434_s10 = scalar_lea.vmem %s507_s18, 2048  ;;  %p439_p12 = scmp.lt.s32.totalorder %s507_s18, %s507_s18 }
  0x1a   :  { %p435_p11 = scmp.ne.s32.totalorder %s507_s18, %s434_s10  ;;  %p440_p13 = scmp.lt.s32.totalorder %s434_s10, %s434_s10 }
  0x1c   :  { %p441_p0 = por %p440_p13, %p439_p12 }
  0x1e   :  { %p442_p1 = pnand %p441_p0, %p435_p11 }
  0x20   :  { %445 = shalt.err (!%p442_p1)
}
  0x21   :  { %s476_s0 = smov 128   ;;  %s477_s11 = smov 8  }
  0x22   :  { %37 = dma.hbm_to_vmem [thread:$0]  %s559_s3, 2048, %s507_s18, [#allocation6], %s476_s0, %s476_s0, %s477_s11  }
  0x23   :  { %468 = dma.done.wait [#allocation3], 64  }
  0x24   :  { %469 = vsyncadd [#allocation3], 4294967232 }
  0x25   :  { %470 = dma.done.wait [#allocation6], 2048  }
  0x26   :  { %471 = vsyncadd [#allocation6], 4294965248  ;;  %v478_v0 = vmov 0.0|0.0   ;;  %vm479_vm0 = vmmov 0   ;;  %v480_v1 = vmov 0.0   ;;  %v45_v2 = vld [vmem:[#allocation5] sm:$0xff] }
  0x27   :  { %344 = vmatprep.subr.bf16.mxu0 %v478_v0  ;;  %306 = vmatprep.mubr.msk.f32.mxu0 %vm479_vm0, %v480_v1  ;;  %v46_v3 = vld [vmem:[#allocation5 + $0x8] sm:$0xff]  ;;  %v47_v4 = vld [vmem:[#allocation5 + $0x10] sm:$0xff]  ;;  %v48_v6 = vld [vmem:[#allocation5 + $0x18] sm:$0xff]  ;;  %s481_s17 = smov [#allocation7]  }
  0x28   :  { %368 = vmatprep.subr.bf16.mxu1 %v478_v0  ;;  %341 = vmatprep.mubr.msk.f32.mxu1 %vm479_vm0, %v480_v1  ;;  %v345_v5 = vpack.c.bf16 %v46_v3, %v45_v2  ;;  %v348_v7 = vpack.c.bf16 %v48_v6, %v47_v4  ;;  %v49_v8 = vld [vmem:[#allocation5 + $0x20] sm:$0xff]  ;;  %v50_v9 = vld [vmem:[#allocation5 + $0x28] sm:$0xff]  ;;  %v51_v11 = vld [vmem:[#allocation5 + $0x30] sm:$0xff]  ;;  %s228_s18 = sshll.u32 %s481_s17, 4  ;;  %s229_s18 = int_to_ptr.vmem [resolvable:$true] %s228_s18 }
  0x29   :  { %v351_v10 = vpack.c.bf16 %v50_v9, %v49_v8  ;;  %v52_v12 = vld [vmem:[#allocation5 + $0x38] sm:$0xff]  ;;  %v53_v14 = vld [vmem:[#allocation5 + $0x40] sm:$0xff]  ;;  %v54_v15 = vld [vmem:[#allocation5 + $0x48] sm:$0xff]  ;;  %s446_s19 = scalar_lea.vmem %s229_s18, 64  ;;  %p451_p3 = scmp.lt.s32.totalorder %s229_s18, %s229_s18 }
  0x2a   :  { %346 = vmatpush3.bf16.msra.mxu0 %v345_v5  ;;  %370 = vmatpush3.bf16.msra.mxu1 %v345_v5  ;;  %v354_v13 = vpack.c.bf16 %v52_v12, %v51_v11  ;;  %v357_v16 = vpack.c.bf16 %v54_v15, %v53_v14  ;;  %v55_v17 = vld [vmem:[#allocation5 + $0x50] sm:$0xff]  ;;  %v56_v18 = vld [vmem:[#allocation5 + $0x58] sm:$0xff]  ;;  %v57_v20 = vld [vmem:[#allocation5 + $0x60] sm:$0xff]  ;;  %p447_p2 = scmp.ne.s32.totalorder %s229_s18, %s446_s19  ;;  %p452_p4 = scmp.lt.s32.totalorder %s446_s19, %s446_s19 }
  0x2b   :  { %347 = vmatprep.subr.bf16.mxu0 %v478_v0  ;;  %371 = vmatprep.subr.bf16.mxu1 %v478_v0  ;;  %v360_v19 = vpack.c.bf16 %v56_v18, %v55_v17  ;;  %v58_v21 = vld [vmem:[#allocation5 + $0x68] sm:$0xff]  ;;  %v59_v23 = vld [vmem:[#allocation5 + $0x70] sm:$0xff]  ;;  %v60_v24 = vld [vmem:[#allocation5 + $0x78] sm:$0xff] }
  0x2c   :  { %v363_v22 = vpack.c.bf16 %v58_v21, %v57_v20  ;;  %v366_v25 = vpack.c.bf16 %v60_v24, %v59_v23  ;;  %v44_v26 = vld [vmem:[#allocation2] sm:$0xf]  ;;  %p453_p5 = por %p452_p4, %p451_p3 }
  0x2d   :  { %v238_v35 = vld [vmem:[%s557_s1] ss:$0 sm:$0xff] }
  0x2e   :  { %349 = vmatpush3.bf16.msra.mxu0 %v348_v7  ;;  %373 = vmatpush3.bf16.msra.mxu1 %v348_v7  ;;  %v239_v37 = vld [vmem:[%s558_s2] ss:$0 sm:$0xff]  ;;  %p454_p6 = pnand %p453_p5, %p447_p2 }
  0x2f   :  { %350 = vmatprep.subr.bf16.mxu0 %v478_v0  ;;  %374 = vmatprep.subr.bf16.mxu1 %v478_v0 }
  0x32   :  { %352 = vmatpush3.bf16.msra.mxu0 %v351_v10  ;;  %376 = vmatpush3.bf16.msra.mxu1 %v351_v10 }
  0x33   :  { %353 = vmatprep.subr.bf16.mxu0 %v478_v0  ;;  %377 = vmatprep.subr.bf16.mxu1 %v478_v0 }
  0x36   :  { %355 = vmatpush3.bf16.msra.mxu0 %v354_v13  ;;  %379 = vmatpush3.bf16.msra.mxu1 %v354_v13 }
  0x37   :  { %356 = vmatprep.subr.bf16.mxu0 %v478_v0  ;;  %380 = vmatprep.subr.bf16.mxu1 %v478_v0 }
  0x3a   :  { %358 = vmatpush3.bf16.msra.mxu0 %v357_v16  ;;  %382 = vmatpush3.bf16.msra.mxu1 %v357_v16 }
  0x3b   :  { %359 = vmatprep.subr.bf16.mxu0 %v478_v0  ;;  %383 = vmatprep.subr.bf16.mxu1 %v478_v0 }
  0x3e   :  { %361 = vmatpush3.bf16.msra.mxu0 %v360_v19  ;;  %385 = vmatpush3.bf16.msra.mxu1 %v360_v19 }
  0x3f   :  { %362 = vmatprep.subr.bf16.mxu0 %v478_v0  ;;  %386 = vmatprep.subr.bf16.mxu1 %v478_v0 }
  0x42   :  { %364 = vmatpush3.bf16.msra.mxu0 %v363_v22  ;;  %388 = vmatpush3.bf16.msra.mxu1 %v363_v22 }
  0x43   :  { %365 = vmatprep.subr.bf16.mxu0 %v478_v0  ;;  %389 = vmatprep.subr.bf16.mxu1 %v478_v0 }
  0x46   :  { %367 = vmatpush3.bf16.msra.mxu0 %v366_v25  ;;  %391 = vmatpush3.bf16.msra.mxu1 %v366_v25 }
  0x49   :  { %307 = vmatmul.mubr.f32.vlgmr.msra.gmra.mrb[0].mxu0 %v44_v26 }
 0x11c   :  { %v127_v27 = vpop.f32.mrb[0].mxu0 }
 0x11d   :  { %v131_v28 = vsub.f32 %v44_v26, %v127_v27  ;;  %v308_v29 = vpop.f32.mrb[1].mxu0 }
 0x11f   :  { %v132_v30 = vmul.f32 %v131_v28, %v131_v28 }
 0x121   :  { %342 = vmatmul.mubr.f32.vlgmr.msra.gmra.mrb[0].mxu1 %v132_v30 }
 0x1f4   :  { %v199_v31 = vpop.f32.mrb[0].mxu1 }
 0x1f5   :  { %v200_v32 = vadd.f32 1e-05, %v199_v31  ;;  %v343_v33 = vpop.f32.mrb[1].mxu1 }
 0x1f7   :  { %400 = vrsqrt.f32 %v200_v32 }
 0x201   :  { %v401_v34 = vpop.eup %400 }
 0x202   :  { %v204_v36 = vmul.f32 %v401_v34, %v131_v28 }
 0x204   :  { %v212_v38 = vmul.f32 %v238_v35, %v204_v36 }
 0x206   :  { %v220_v39 = vadd.f32 %v239_v37, %v212_v38 }
 0x208   :  { %221 = vst [vmem:[#allocation7] sm:$0xf] %v220_v39 }
 0x209   :  { %457 = shalt.err (!%p454_p6)
}
 0x20a   :  { %s458_s21 = scalar_lea.hbm %s560_s4, 64 }
 0x20b   :  { %p459_p7 = scmp.ne.s32.totalorder %s560_s4, %s458_s21  ;;  %p462_p8 = scmp.lt.u32.totalorder %s458_s21, %s560_s4 }
 0x20d   :  { %p464_p9 = pnand %p462_p8, %p459_p7 }
 0x20f   :  { %467 = shalt.err (!%p464_p9)
}
 0x210   :  { %231 = dma.vmem_to_hbm [thread:$0]  %s229_s18, 64, %s560_s4, [#allocation4]  }
 0x211   :  { %472 = dma.done.wait [#allocation4], 64  }
 0x212   :  { %473 = vsyncadd [#allocation4], 4294967232 }
 0x213   :  { %235 = vsyncpa [#allocation3], 1 }
 0x214   :  { %236 = vsyncpa [#allocation6], 1 }
 0x215   :  { %237 = vsyncpa [#allocation4], 1 }

</bundles_post_ra>
